<compile_context>
chip_gen: v5e
topology: v5e:2x2
jax: 0.10.0
libtpu: 0.0.40
codegen_flags: <defaults>
</compile_context>

<pallas_src>
import functools

import jax
import jax.numpy as jnp
from jax.experimental import pallas as pl
from jax.experimental.pallas import tpu as pltpu


# ----------------------------- tiling / compiler helpers -----------------------------

_TM = 256                     # rows per block        (multiple of 8)
_TN = 512                     # output cols per block (multiple of 128)
_TK = 512                     # contraction tile      (multiple of 128, must divide K)
_VMEM_LIMIT = 32 * 1024 * 1024  # fits every generation's scoped-VMEM budget


def _mosaic_params(dimension_semantics):
    return pltpu.CompilerParams(
        dimension_semantics=dimension_semantics,
        vmem_limit_bytes=_VMEM_LIMIT,
    )


def _pick_k_tile(K, preferred=_TK, align=128):
    """Largest multiple of `align` that divides K and is <= preferred (else full K).

    K must be tiled exactly (no masked remainder): padded garbage in the contraction
    would corrupt valid outputs, unlike padded M/N blocks whose stores are masked."""
    if K <= preferred:
        return K
    t = (preferred // align) * align
    while t >= align:
        if K % t == 0:
            return t
        t -= align
    return K


# ----------------------------- fused linear kernel -----------------------------

def _linear_kernel(*refs, activation, has_ln, has_residual):
    it = iter(refs)
    x_ref = next(it)
    w_ref = next(it)
    b_ref = next(it)
    g_ref = next(it) if has_ln else None
    be_ref = next(it) if has_ln else None
    r_ref = next(it) if has_residual else None
    o_ref = next(it)
    acc_ref = next(it)

    @pl.when(pl.program_id(2) == 0)
    def _():
        acc_ref[...] = jnp.zeros_like(acc_ref)

    x = x_ref[...].astype(jnp.float32)
    if has_ln:
        # LayerNorm (eps=1e-5) fused onto the LHS tile; only used when tk == K.
        mean = jnp.mean(x, axis=-1, keepdims=True)
        var = jnp.mean(jnp.square(x - mean), axis=-1, keepdims=True)
        x = (x - mean) * jax.lax.rsqrt(var + 1e-5)
        x = x * g_ref[...].astype(jnp.float32) + be_ref[...].astype(jnp.float32)

    # bf16 MXU operands, f32 accumulation.
    acc_ref[...] += jnp.dot(
        x.astype(jnp.bfloat16),
        w_ref[...].astype(jnp.bfloat16),
        preferred_element_type=jnp.float32,
    )

    @pl.when(pl.program_id(2) == pl.num_programs(2) - 1)
    def _():
        out = acc_ref[...] + b_ref[...].astype(jnp.float32)
        if activation == "quick_gelu":
            out = out * jax.nn.sigmoid(1.702 * out)   # QuickGELU: x * sigmoid(1.702 x)
        if has_residual:
            out = out + r_ref[...].astype(jnp.float32)
        o_ref[...] = out.astype(o_ref.dtype)


def linear(x, w, b, activation=None, ln=None, residual=None):
    """out = [residual +] act( LN?(x) @ w + b )   — tiled (M, N, K) matmul.

    x: (M, K) f32 activations;  w: (K, N) bf16/f32 weights;  b: (N,) f32 bias.
    ln: optional (gamma, beta) of shape (K,) -> LayerNorm fused on the LHS tile
        (forces tk == K, which is always the D-sized contraction here).
    residual: optional (M, N) tensor added after bias/activation (fused epilogue).
    """
    M, K = x.shape
    K2, N = w.shape
    assert K == K2
    has_ln = ln is not None
    has_res = residual is not None

    tm = M if M <= _TM else _TM
    tn = N if N <= _TN else _TN
    tk = K if has_ln else _pick_k_tile(K)
    nm, nn, nk = pl.cdiv(M, tm), pl.cdiv(N, tn), K // tk

    inputs = [x, w, b.reshape(1, N)]
    in_specs = [
        pl.BlockSpec((tm, tk), lambda i, j, k: (i, k)),
        pl.BlockSpec((tk, tn), lambda i, j, k: (k, j)),
        pl.BlockSpec((1, tn), lambda i, j, k: (0, j)),
    ]
    if has_ln:
        g, be = ln
        inputs += [g.reshape(1, K), be.reshape(1, K)]
        in_specs += [
            pl.BlockSpec((1, tk), lambda i, j, k: (0, k)),
            pl.BlockSpec((1, tk), lambda i, j, k: (0, k)),
        ]
    if has_res:
        inputs.append(residual)
        in_specs.append(pl.BlockSpec((tm, tn), lambda i, j, k: (i, j)))

    return pl.pallas_call(
        functools.partial(_linear_kernel, activation=activation,
                          has_ln=has_ln, has_residual=has_res),
        out_shape=jax.ShapeDtypeStruct((M, N), x.dtype),
        grid=(nm, nn, nk),
        in_specs=in_specs,
        out_specs=pl.BlockSpec((tm, tn), lambda i, j, k: (i, j)),
        scratch_shapes=[pltpu.VMEM((tm, tn), jnp.float32)],
        compiler_params=_mosaic_params(("parallel", "parallel", "arbitrary")),
    )(*inputs)


# ----------------------------- standalone layernorm (ln_pre) -----------------------------

def _layernorm_kernel(x_ref, g_ref, b_ref, o_ref):
    x = x_ref[...].astype(jnp.float32)
    mean = jnp.mean(x, axis=-1, keepdims=True)
    var = jnp.mean(jnp.square(x - mean), axis=-1, keepdims=True)
    y = (x - mean) * jax.lax.rsqrt(var + 1e-5)
    o_ref[...] = (y * g_ref[...] + b_ref[...]).astype(o_ref.dtype)


def layernorm(x, g, b, tm=512):
    """x: (M, D); LayerNorm over last dim, eps=1e-5, fp32 internal; row-tiled."""
    M, D = x.shape
    tm = M if M <= tm else tm
    return pl.pallas_call(
        _layernorm_kernel,
        out_shape=jax.ShapeDtypeStruct((M, D), x.dtype),
        grid=(pl.cdiv(M, tm),),
        in_specs=[
            pl.BlockSpec((tm, D), lambda i: (i, 0)),
            pl.BlockSpec((1, D), lambda i: (0, 0)),
            pl.BlockSpec((1, D), lambda i: (0, 0)),
        ],
        out_specs=pl.BlockSpec((tm, D), lambda i: (i, 0)),
        compiler_params=_mosaic_params(("parallel",)),
    )(x, g.reshape(1, D), b.reshape(1, D))


# ----------------------------- attention kernel -----------------------------

def _attention_kernel(q_ref, k_ref, v_ref, o_ref, *, heads):
    # q is pre-scaled: head_dim**-0.5 folded into Wq/bq at parameter-prep time.
    D = q_ref.shape[2]
    Dh = D // heads
    q = q_ref[0]
    k = k_ref[0]
    v = v_ref[0]
    outs = []
    for h in range(heads):                       # static unroll over heads
        sl = slice(h * Dh, (h + 1) * Dh)
        qh = q[:, sl].astype(jnp.bfloat16)
        kh = k[:, sl].astype(jnp.bfloat16)
        vh = v[:, sl].astype(jnp.bfloat16)
        # Contract directly over Dh (no explicit k.T materialization).
        s = jax.lax.dot_general(qh, kh, (((1,), (1,)), ((), ())),
                                preferred_element_type=jnp.float32)
        s = s - jnp.max(s, axis=-1, keepdims=True)
        p = jnp.exp(s)
        p = p * pl.reciprocal(jnp.sum(p, axis=-1, keepdims=True), approx=True)
        outs.append(jnp.dot(p.astype(jnp.bfloat16), vh,
                            preferred_element_type=jnp.float32))
    # Single lane-dense (L, D) store per batch element.
    o_ref[0] = jnp.concatenate(outs, axis=-1).astype(o_ref.dtype)


def attention(q, k, v, heads):
    """q, k, v: (B, L, D) with D = heads*Dh; per-head softmax(q@k^T)@v; output (B, L, D)."""
    B, L, D = q.shape
    spec = pl.BlockSpec((1, L, D), lambda b: (b, 0, 0))
    return pl.pallas_call(
        functools.partial(_attention_kernel, heads=heads),
        out_shape=jax.ShapeDtypeStruct((B, L, D), q.dtype),
        grid=(B,),
        in_specs=[spec, spec, spec],
        out_specs=spec,
        compiler_params=_mosaic_params(("parallel",)),
    )(q, k, v)


# ----------------------------- parameters -----------------------------

def init_params(key, input_resolution, patch_size, width, layers, heads, output_dim):
    scale = width ** -0.5
    n_tokens = (input_resolution // patch_size) ** 2 + 1
    head_dim = width // heads
    attn_scale = head_dim ** -0.5
    wdt = jnp.bfloat16                       # MXU weights stored bf16 (halves HBM traffic)
    keys = jax.random.split(key, 4 + layers)

    def n(k, shape, s=0.02):
        return (s * jax.random.normal(k, shape)).astype(jnp.float32)

    params = {
        # conv1 weight (width, 3, P, P) pre-flattened to (3*P*P, width) for the
        # patchify-matmul (exact for stride == kernel_size, bias-free Conv2d).
        "conv1_w": n(keys[0], (width, 3 * patch_size * patch_size)).T.astype(wdt),
        "class_embedding": n(keys[1], (width,), scale),
        "positional_embedding": n(keys[2], (n_tokens, width), scale),
        "ln_pre_g": jnp.ones((width,), jnp.float32),
        "ln_pre_b": jnp.zeros((width,), jnp.float32),
        "ln_post_g": jnp.ones((width,), jnp.float32),
        "ln_post_b": jnp.zeros((width,), jnp.float32),
        "proj": n(keys[3], (width, output_dim), scale).astype(wdt),
        "blocks": [],
    }
    for li in range(layers):
        bk = jax.random.split(keys[4 + li], 6)
        wq, wk, wv = n(bk[0], (width, width)), n(bk[1], (width, width)), n(bk[2], (width, width))
        # Fused q/k/v projection; attention scale folded into the q slice (weight + bias).
        w_qkv = jnp.concatenate([wq * attn_scale, wk, wv], axis=1).astype(wdt)
        b_qkv = jnp.zeros((3 * width,), jnp.float32)
        params["blocks"].append({
            "ln1_g": jnp.ones((width,), jnp.float32),
            "ln1_b": jnp.zeros((width,), jnp.float32),
            "w_qkv": w_qkv,
            "b_qkv": b_qkv,
            "wo": n(bk[3], (width, width)).astype(wdt),
            "bo": jnp.zeros((width,), jnp.float32),
            "ln2_g": jnp.ones((width,), jnp.float32),
            "ln2_b": jnp.zeros((width,), jnp.float32),
            "w_fc": n(bk[4], (width, width * 4)).astype(wdt),
            "b_fc": jnp.zeros((width * 4,), jnp.float32),
            "w_proj": n(bk[5], (width * 4, width)).astype(wdt),
            "b_proj": jnp.zeros((width,), jnp.float32),
        })
    return params


# ----------------------------- forward pass -----------------------------

def residual_attention_block(x2d, lp, heads, B, L, D):
    # attention branch: x + out_proj(attn(ln_1(x)));  ln_1 fused into the QKV matmul,
    # residual add fused into the out_proj epilogue.
    qkv = linear(x2d, lp["w_qkv"], lp["b_qkv"], ln=(lp["ln1_g"], lp["ln1_b"]))
    q = qkv[:, :D].reshape(B, L, D)
    k = qkv[:, D:2 * D].reshape(B, L, D)
    v = qkv[:, 2 * D:].reshape(B, L, D)
    a = attention(q, k, v, heads=heads).reshape(B * L, D)
    x2d = linear(a, lp["wo"], lp["bo"], residual=x2d)

    # MLP branch: x + c_proj(QuickGELU(c_fc(ln_2(x))));  ln_2 + QuickGELU fused into c_fc,
    # residual add fused into the c_proj epilogue.
    h = linear(x2d, lp["w_fc"], lp["b_fc"], activation="quick_gelu",
               ln=(lp["ln2_g"], lp["ln2_b"]))
    x2d = linear(h, lp["w_proj"], lp["b_proj"], residual=x2d)
    return x2d


def visual_transformer_forward(params, x, *, patch_size, width, heads):
    """x: NCHW float32 image batch -> (B, output_dim)."""
    B, C, H, W = x.shape
    p = patch_size
    Hp, Wp = H // p, W // p
    D = width

    # conv1 with stride == kernel == patch_size and no bias == patchify + matmul.
    patches = (
        x.reshape(B, C, Hp, p, Wp, p)
        .transpose(0, 2, 4, 1, 3, 5)                 # (B, Hp, Wp, C, p, p)
        .reshape(B * Hp * Wp, C * p * p)
    )
    tok = linear(patches, params["conv1_w"], jnp.zeros((D,), jnp.float32))
    tok = tok.reshape(B, Hp * Wp, D)

    # prepend class token, add positional embedding
    cls = jnp.broadcast_to(params["class_embedding"].reshape(1, 1, D), (B, 1, D))
    xt = jnp.concatenate([cls, tok], axis=1) + params["positional_embedding"][None]
    L = xt.shape[1]

    x2d = layernorm(xt.reshape(B * L, D), params["ln_pre_g"], params["ln_pre_b"])

    # transformer (PyTorch runs LND order; batch-major 2-D slab is equivalent)
    for lp in params["blocks"]:
        x2d = residual_attention_block(x2d, lp, heads, B, L, D)

    # ln_post on the CLS token fused into the final projection.
    cls_out = x2d.reshape(B, L, D)[:, 0, :]
    out = linear(cls_out, params["proj"],
                 jnp.zeros((params["proj"].shape[1],), jnp.float32),
                 ln=(params["ln_post_g"], params["ln_post_b"]))
    return out


# ----------------------------- demo -----------------------------

if __name__ == "__main__":
    # Small configuration consistent with the module:
    # input_resolution=16, patch_size=8 -> 4 patches + CLS = 5 tokens
    input_resolution = 16
    patch_size = 8
    width = 32
    layers = 2
    heads = 4
    output_dim = 16
    batch = 2

    key = jax.random.PRNGKey(0)
    pkey, xkey = jax.random.split(key)
    params = init_params(pkey, input_resolution, patch_size, width, layers, heads, output_dim)

    x = jax.random.normal(xkey, (batch, 3, input_resolution, input_resolution), dtype=jnp.float32)

    out = visual_transformer_forward(params, x, patch_size=patch_size, width=width, heads=heads)
    out = jax.block_until_ready(out)
    assert out.shape == (batch, output_dim), out.shape
    print("KERNEL_OK")
</pallas_src>

<mosaic_0001>
module attributes {stable_mosaic.version = 11 : i64} {
  func.func @_linear_kernel(%arg0: i32, %arg1: i32, %arg2: i32, %arg3: memref<8x192xf32, #tpu.memory_space<vmem>>, %arg4: memref<192x32xbf16, #tpu.memory_space<vmem>>, %arg5: memref<1x32xf32, #tpu.memory_space<vmem>>, %arg6: memref<8x32xf32, #tpu.memory_space<vmem>>, %arg7: memref<8x32xf32, #tpu.memory_space<vmem>>) attributes {dimension_semantics = [#tpu.dimension_semantics<parallel>, #tpu.dimension_semantics<parallel>, #tpu.dimension_semantics<arbitrary>], iteration_bounds = array<i64: 1, 1, 1>, scalar_prefetch = 0 : i64, scratch_operands = 1 : i64, tpu.core_type = #tpu.core_type<tc>, window_params = [{transform_indices = @transform_0, window_bounds = array<i64: 8, 192>}, {transform_indices = @transform_1, window_bounds = array<i64: 192, 32>}, {transform_indices = @transform_2, window_bounds = array<i64: 1, 32>}, {transform_indices = @transform_3, window_bounds = array<i64: 8, 32>}]} {
    %c0_i32 = arith.constant 0 : i32
    %0 = arith.cmpi eq, %arg2, %c0_i32 : i32
    %1 = arith.extui %0 : i1 to i32
    %c0_i32_0 = arith.constant 0 : i32
    %2 = arith.cmpi ne, %1, %c0_i32_0 : i32
    scf.if %2 {
      %cst_10 = arith.constant 0.000000e+00 : f32
      %13 = vector.broadcast %cst_10 : f32 to vector<8x32xf32>
      %c0_11 = arith.constant 0 : index
      %c0_12 = arith.constant 0 : index
      %14 = vector.load %arg7[%c0_11, %c0_12] : memref<8x32xf32, #tpu.memory_space<vmem>>, vector<8x32xf32>
      tpu.vector_store %arg7[%c0_11, %c0_12], %13 {strides = array<i32>} : memref<8x32xf32, #tpu.memory_space<vmem>>, vector<8x32xf32>,
    } else {
    }
    %c0 = arith.constant 0 : index
    %c0_1 = arith.constant 0 : index
    %3 = vector.load %arg3[%c0, %c0_1] : memref<8x192xf32, #tpu.memory_space<vmem>>, vector<8x192xf32>
    %c0_2 = arith.constant 0 : index
    %c0_3 = arith.constant 0 : index
    %4 = vector.load %arg7[%c0_2, %c0_3] : memref<8x32xf32, #tpu.memory_space<vmem>>, vector<8x32xf32>
    %5 = arith.truncf %3 : vector<8x192xf32> to vector<8x192xbf16>
    %c0_4 = arith.constant 0 : index
    %c0_5 = arith.constant 0 : index
    %6 = vector.load %arg4[%c0_4, %c0_5] : memref<192x32xbf16, #tpu.memory_space<vmem>>, vector<192x32xbf16>
    %cst = arith.constant dense<0.000000e+00> : vector<8x32xf32>
    %7 = tpu.matmul %5, %6, %cst {dimension_numbers = #tpu.dot_dimension_numbers<[1], [0], [0], [1], [0, 0, 1, 1], [], []>} : vector<8x192xbf16>, vector<192x32xbf16>, vector<8x32xf32> -> vector<8x32xf32>
    %8 = arith.addf %4, %7 : vector<8x32xf32>
    %c0_6 = arith.constant 0 : index
    %c0_7 = arith.constant 0 : index
    %9 = vector.load %arg7[%c0_6, %c0_7] : memref<8x32xf32, #tpu.memory_space<vmem>>, vector<8x32xf32>
    tpu.vector_store %arg7[%c0_6, %c0_7], %8 {strides = array<i32>} : memref<8x32xf32, #tpu.memory_space<vmem>>, vector<8x32xf32>,
    %c0_i32_8 = arith.constant 0 : i32
    %10 = arith.cmpi eq, %arg2, %c0_i32_8 : i32
    %11 = arith.extui %10 : i1 to i32
    %c0_i32_9 = arith.constant 0 : i32
    %12 = arith.cmpi ne, %11, %c0_i32_9 : i32
    scf.if %12 {
      %c0_10 = arith.constant 0 : index
      %c0_11 = arith.constant 0 : index
      %13 = vector.load %arg7[%c0_10, %c0_11] : memref<8x32xf32, #tpu.memory_space<vmem>>, vector<8x32xf32>
      %c0_12 = arith.constant 0 : index
      %c0_13 = arith.constant 0 : index
      %14 = vector.load %arg5[%c0_12, %c0_13] : memref<1x32xf32, #tpu.memory_space<vmem>>, vector<1x32xf32>
      %15 = vector.broadcast %14 : vector<1x32xf32> to vector<8x32xf32>
      %16 = arith.addf %13, %15 : vector<8x32xf32>
      %c0_14 = arith.constant 0 : index
      %c0_15 = arith.constant 0 : index
      %17 = vector.load %arg6[%c0_14, %c0_15] : memref<8x32xf32, #tpu.memory_space<vmem>>, vector<8x32xf32>
      tpu.vector_store %arg6[%c0_14, %c0_15], %16 {strides = array<i32>} : memref<8x32xf32, #tpu.memory_space<vmem>>, vector<8x32xf32>,
    } else {
    }
    return
  }
  func.func @transform_0(%arg0: i32, %arg1: i32, %arg2: i32) -> (i32, i32) {
    %c0_i32 = arith.constant 0 : i32
    return %arg0, %arg2 : i32, i32
  }
  func.func @transform_1(%arg0: i32, %arg1: i32, %arg2: i32) -> (i32, i32) {
    %c0_i32 = arith.constant 0 : i32
    return %arg2, %arg1 : i32, i32
  }
  func.func @transform_2(%arg0: i32, %arg1: i32, %arg2: i32) -> (i32, i32) {
    %c0_i32 = arith.constant 0 : i32
    %c0_i32_0 = arith.constant 0 : i32
    return %c0_i32, %arg1 : i32, i32
  }
  func.func @transform_3(%arg0: i32, %arg1: i32, %arg2: i32) -> (i32, i32) {
    %c0_i32 = arith.constant 0 : i32
    return %arg0, %arg1 : i32, i32
  }
}

</mosaic_0001>

<bundles_post_ra>
// kernel: tpu_custom_call.1
= control target key start
LH: loop header
LB: loop body
LE: loop exit
PB: predicated region body
PF: predicated region fallthrough
CT: control target
= control target key end

     0   :  { %s345_s0 = inlined_call_operand.vmem [shape: f32[8,192], index: 0, kind: input, shape index: {}]   ;;  %s346_s1 = inlined_call_operand.vmem [shape: bf16[192,32], index: 1, kind: input, shape index: {}]   ;;  %s347_s2 = inlined_call_operand.vmem [shape: f32[1,32], index: 2, kind: input, shape index: {}]   ;;  %s348_s3 = inlined_call_operand.hbm [shape: f32[8,32], index: 3, kind: output, shape index: {}]  }
   0x1   :  { %v238_v0 = vld [vmem:[%s346_s1 + $0x38] sm:$0xff]  ;;  %v237_v2 = vld [vmem:[%s346_s1 + $0x30] sm:$0xff] }
   0x2   :  { %v242_v1 = vld [vmem:[%s346_s1 + $0x58] sm:$0xff]  ;;  %127 = vmatpush.bf16.msra.mxu0 %v238_v0  ;;  %v241_v3 = vld [vmem:[%s346_s1 + $0x50] sm:$0xff] }
   0x3   :  { %144 = vmatpush.bf16.msra.mxu1 %v242_v1 }
   0x4   :  { %8 = vsyncpa [#allocation4], 0  ;;  %v236_v4 = vld [vmem:[%s346_s1 + $0x28] sm:$0xff]  ;;  %v235_v6 = vld [vmem:[%s346_s1 + $0x20] sm:$0xff]  ;;  %vm123_vm0 = vcmask 523264   ;;  %vm20_vm1 = vcmask 261120  }
   0x5   :  { %v240_v5 = vld [vmem:[%s346_s1 + $0x48] sm:$0xff]  ;;  %v239_v7 = vld [vmem:[%s346_s1 + $0x40] sm:$0xff]  ;;  %v234_v9 = vld [vmem:[%s346_s1 + $0x18] sm:$0xff]  ;;  %v272_v16 = vmov 0.0   ;;  %s173_s17 = sshll.u32 %s348_s3, 4  ;;  %s174_s17 = int_to_ptr.hbm [resolvable:$true] %s173_s17 }
   0x6   :  { %128 = vmatpush.bf16.msra.mxu0 %v237_v2  ;;  %v23_v8 = vld [vmem:[%s345_s0 + $0x8] sm:$0xff]  ;;  %v233_v11 = vld [vmem:[%s346_s1 + $0x10] sm:$0xff]  ;;  %v231_v13 = vld [vmem:[%s346_s1] sm:$0xff]  ;;  %21 = vst.msk [vmem:[#allocation2] sm:$0xff] %vm20_vm1, %v272_v16 }
   0x7   :  { %145 = vmatpush.bf16.msra.mxu1 %v241_v3  ;;  %v26_v10 = vpack.c.bf16 %v23_v8, %v23_v8  ;;  %v232_v12 = vld [vmem:[%s346_s1 + $0x8] sm:$0xff]  ;;  %v22_v14 = vld [vmem:[%s345_s0] sm:$0xff]  ;;  %s273_s0 = smov [#allocation3]  }
   0x8   :  { %v25_v15 = vpack.c.bf16 %v22_v14, %v22_v14  ;;  %v245_v24 = vld [vmem:[%s347_s2] ss:$0 sm:$0xff]  ;;  %s171_s14 = sshll.u32 %s273_s0, 4  ;;  %s172_s14 = int_to_ptr.vmem [resolvable:$true] %s171_s14 }
   0xa   :  { %129 = vmatpush.bf16.msra.mxu0 %v236_v4 }
   0xb   :  { %146 = vmatpush.bf16.msra.mxu1 %v240_v5 }
   0xd   :  { %v24_v19 = vld [vmem:[#allocation2] sm:$0xff] }
   0xe   :  { %130 = vmatpush.bf16.msra.mxu0 %v235_v6 }
   0xf   :  { %147 = vmatpush.bf16.msra.mxu1 %v239_v7 }
  0x12   :  { %131 = vmatpush.bf16.msra.mxu0 %v234_v9  ;;  %230 = vmatmul.msk.bf16.vlgmr.msra.gmra.mxu1 %vm123_vm0, %v26_v10 }
  0x16   :  { %132 = vmatpush.bf16.msra.mxu0 %v233_v11 }
  0x1a   :  { %133 = vmatpush.bf16.msra.mxu0 %v232_v12 }
  0x1e   :  { %134 = vmatpush.bf16.msra.mxu0 %v231_v13 }
  0x21   :  { %135 = vmatmul.bf16.vlgmr.msra.gmra.mxu0 %v25_v15 }
  0x8f   :  { %v149_v17 = vpop.f32.mrf.mxu1 }
  0x97   :  { %v151_v18 = vpop.f32.mrf.mxu1 }
  0x9e   :  { %v136_v20 = vpop.f32.mrf.mxu0 }
  0x9f   :  { %v150_v21 = vadd.f32 %v149_v17, %v136_v20 }
  0xa1   :  { %v153_v22 = vadd.f32 %v150_v21, %v24_v19 }
  0xa3   :  { %155 = vst.msk [vmem:[#allocation2] sm:$0xff] %vm20_vm1, %v153_v22 }
  0xa6   :  { %v138_v23 = vpop.f32.mrf.mxu0 }
  0xaa   :  { %v159_v25 = vld [vmem:[#allocation2] sm:$0xff] }
  0xab   :  { %v164_v26 = vadd.f32 %v245_v24, %v159_v25 }
  0xad   :  { %165 = vst.msk [vmem:[#allocation3] sm:$0xff] %vm20_vm1, %v164_v26 }
  0xae   :  { %176 = dma.vmem_to_hbm [thread:$0]  %s172_s14, 128, %s174_s17, [#allocation4]  }
  0xaf   :  { %270 = dma.done.wait [#allocation4], 128  }
  0xb0   :  { %271 = vsyncadd [#allocation4], 4294967168 }
  0xb1   :  { %181 = vsyncpa [#allocation4], 1 }

</bundles_post_ra>
